<compile_context>
chip_gen: v5e
topology: v5e:2x2
jax: 0.10.0
libtpu: 0.0.40
codegen_flags: <defaults>
</compile_context>

<pallas_src>
import jax
import jax.numpy as jnp
import numpy as np
from jax.experimental import pallas as pl

# --- module hyperparameters (small, consistent with the torch module) ---
DIM = 32
DIM_HEAD = 16
HEADS = 4
FF_MULT = 4
SEQ = 8
BATCH = 2

ATTN_INNER = DIM_HEAD * HEADS            # 64
FF_INNER = DIM * FF_MULT                 # 128
SCALE = DIM_HEAD ** (-0.5)
LN_EPS = 1e-5
NEG_BIAS = -1e30                         # plain python float (passed as data)

# reordered fused layout used *inside* the kernel: [ff_x | gate | q | k | v]
_FFX0 = 0
_GATE0 = FF_INNER                        # 128
_Q0 = 2 * FF_INNER                       # 256
_K0 = _Q0 + ATTN_INNER                   # 320
_V0 = _K0 + DIM_HEAD                     # 336
FUSED = _V0 + DIM_HEAD                   # 352 (== attn_inner + 2*dim_head + 2*ff_inner)


def parallel_block_kernel(x_ref, wf_ref, cos_q_ref, sin_q_ref,
                          cos_k_ref, sin_k_ref, bias_ref,
                          wo_ref, wff_ref, o_ref):
    rows = x_ref.shape[0]                                   # BATCH*SEQ (static)

    # ----- LayerNorm (gamma folded into wf_ref, beta fixed to 0) -----
    x = x_ref[...]                                          # (rows, DIM)
    mean = jnp.mean(x, axis=-1, keepdims=True)
    var = jnp.mean((x - mean) ** 2, axis=-1, keepdims=True)
    xn = (x - mean) * jax.lax.rsqrt(var + LN_EPS)

    # ----- single fused projection (MXU), reordered + gamma/scale-folded weight -----
    fused = jnp.dot(xn, wf_ref[...], preferred_element_type=jnp.float32)   # (rows, FUSED)

    ff_x = fused[:, _FFX0:_FFX0 + FF_INNER]                 # 128-lane aligned
    gate = fused[:, _GATE0:_GATE0 + FF_INNER]               # 128-lane aligned
    q = fused[:, _Q0:_Q0 + ATTN_INNER]                      # 128-lane aligned
    k = fused[:, _K0:_K0 + DIM_HEAD]
    v = fused[:, _V0:_V0 + DIM_HEAD]

    # ----- stack heads along rows: (rows, H*Dh) -> (H*rows, Dh) -----
    q_r = jnp.concatenate(
        [q[:, h * DIM_HEAD:(h + 1) * DIM_HEAD] for h in range(HEADS)], axis=0)

    # rotary with the rotate_half sign baked into the sin table
    # (a pltpu.roll variant would move the lane swap to the XLU on hardware)
    d2 = DIM_HEAD // 2

    def rope(t, cos, sin_signed):
        swapped = jnp.concatenate([t[:, d2:], t[:, :d2]], axis=-1)
        return t * cos + swapped * sin_signed

    q_r = rope(q_r, cos_q_ref[...], sin_q_ref[...])         # scale already in Wq
    k = rope(k, cos_k_ref[...], sin_k_ref[...])

    # ----- one batched multi-query attention pass for all heads -----
    sim = jnp.dot(q_r, k.T, preferred_element_type=jnp.float32)   # (H*rows, rows)
    sim = sim + bias_ref[...]                               # block-diag causal bias
    sim = sim - jnp.max(sim, axis=-1, keepdims=True)
    p = jnp.exp(sim)
    denom = jnp.sum(p, axis=-1, keepdims=True)

    out_r = jnp.dot(p, v, preferred_element_type=jnp.float32)     # (H*rows, Dh)
    out_r = out_r * pl.reciprocal(denom, approx=True)             # flash-style norm (EUP)

    # back to 'b n (h d)' layout: (H*rows, Dh) -> (rows, H*Dh)
    out = jnp.concatenate(
        [out_r[h * rows:(h + 1) * rows, :] for h in range(HEADS)], axis=-1)

    attn_out = jnp.dot(out, wo_ref[...], preferred_element_type=jnp.float32)   # (rows, DIM)

    # ----- SwiGLU feed-forward branch -----
    ff_h = ff_x * (gate * jax.nn.sigmoid(gate))                    # silu(gate) * x
    ff_out = jnp.dot(ff_h, wff_ref[...], preferred_element_type=jnp.float32)   # (rows, DIM)

    o_ref[...] = attn_out + ff_out


def _rotary_tables(n):
    """cos table and sign-baked sin table, shape (n, DIM_HEAD) each."""
    inv_freq = 1.0 / (10000.0 ** (jnp.arange(0, DIM_HEAD, 2, dtype=jnp.float32) / DIM_HEAD))
    freqs = jnp.arange(n, dtype=jnp.float32)[:, None] * inv_freq[None, :]     # (n, Dh/2)
    ang = jnp.concatenate([freqs, freqs], axis=-1)                            # (n, Dh)
    sign = jnp.concatenate([-jnp.ones((1, DIM_HEAD // 2), jnp.float32),
                            jnp.ones((1, DIM_HEAD // 2), jnp.float32)], axis=-1)
    return jnp.cos(ang), jnp.sin(ang) * sign


def parallel_transformer_block(x, gamma, w_fused, w_attn_out, w_ff_out):
    b, n, d = x.shape
    rows = b * n

    # fold LayerNorm gamma (beta == 0) and the attention scale into the fused
    # projection weight, and reorder columns to [ff_x | gate | q | k | v]
    wf = w_fused * gamma[:, None].astype(w_fused.dtype)
    w_q = wf[:, :ATTN_INNER] * SCALE
    w_k = wf[:, ATTN_INNER:ATTN_INNER + DIM_HEAD]
    w_v = wf[:, ATTN_INNER + DIM_HEAD:ATTN_INNER + 2 * DIM_HEAD]
    w_ff = wf[:, ATTN_INNER + 2 * DIM_HEAD:]                 # [ff_x | gate]
    wf_r = jnp.concatenate([w_ff, w_q, w_k, w_v], axis=-1)   # (d, FUSED)

    # rotary tables, tiled host-side for the flattened-batch / stacked-head layouts
    cos, sin_signed = _rotary_tables(n)                      # (n, Dh)
    cos_k = jnp.tile(cos, (b, 1))                            # (rows, Dh)
    sin_k = jnp.tile(sin_signed, (b, 1))
    cos_q = jnp.tile(cos, (HEADS * b, 1))                    # (HEADS*rows, Dh)
    sin_q = jnp.tile(sin_signed, (HEADS * b, 1))

    # block-diagonal causal mask as an additive bias, hoisted out of the kernel
    idx = jnp.arange(rows)
    same_batch = (idx[:, None] // n) == (idx[None, :] // n)
    causal_ok = (idx[None, :] % n) <= (idx[:, None] % n)
    bias = jnp.where(same_batch & causal_ok, 0.0, NEG_BIAS).astype(jnp.float32)
    bias = jnp.tile(bias, (HEADS, 1))                        # (HEADS*rows, rows)

    x2 = x.reshape(rows, d)

    full = lambda shape: pl.BlockSpec(shape, lambda: (0, 0))
    out2 = pl.pallas_call(
        parallel_block_kernel,
        out_shape=jax.ShapeDtypeStruct((rows, d), jnp.float32),
        in_specs=[
            full((rows, d)),                   # x (flattened batch)
            full((d, FUSED)),                  # fused proj weight (reordered, folded)
            full((HEADS * rows, DIM_HEAD)),    # cos for stacked q
            full((HEADS * rows, DIM_HEAD)),    # signed sin for stacked q
            full((rows, DIM_HEAD)),            # cos for k
            full((rows, DIM_HEAD)),            # signed sin for k
            full((HEADS * rows, rows)),        # additive block-diag causal bias
            full((ATTN_INNER, d)),             # attn_out weight
            full((FF_INNER, d)),               # ff_out weight
        ],
        out_specs=full((rows, d)),
    )(x2, wf_r, cos_q, sin_q, cos_k, sin_k, bias, w_attn_out, w_ff_out)
    return out2.reshape(b, n, d)


def reference(x, gamma, w_fused, w_attn_out, w_ff_out):
    """Pure-JAX mirror of the PyTorch forward (original param layout)."""
    b, n, d = x.shape
    mean = x.mean(-1, keepdims=True)
    var = ((x - mean) ** 2).mean(-1, keepdims=True)
    xn = (x - mean) / jnp.sqrt(var + LN_EPS) * gamma
    fused = xn @ w_fused
    q, k, v, ff = jnp.split(
        fused, [ATTN_INNER, ATTN_INNER + DIM_HEAD, ATTN_INNER + 2 * DIM_HEAD], axis=-1)
    q = q.reshape(b, n, HEADS, DIM_HEAD).transpose(0, 2, 1, 3)    # b h n d

    inv_freq = 1.0 / (10000.0 ** (jnp.arange(0, DIM_HEAD, 2, dtype=jnp.float32) / DIM_HEAD))
    freqs = jnp.arange(n, dtype=jnp.float32)[:, None] * inv_freq[None, :]
    ang = jnp.concatenate([freqs, freqs], axis=-1)
    cos, sin = jnp.cos(ang), jnp.sin(ang)

    def rot_half(t):
        t1, t2 = jnp.split(t, 2, axis=-1)
        return jnp.concatenate([-t2, t1], axis=-1)

    def rope(t):
        return t * cos + rot_half(t) * sin

    q = rope(q) * SCALE
    k = rope(k)
    sim = jnp.einsum('bhid,bjd->bhij', q, k)
    mask = jnp.triu(jnp.ones((n, n), dtype=bool), 1)
    sim = jnp.where(mask, -jnp.finfo(jnp.float32).max, sim)
    sim = sim - sim.max(-1, keepdims=True)
    attn = jax.nn.softmax(sim, axis=-1)
    out = jnp.einsum('bhij,bjd->bhid', attn, v)
    out = out.transpose(0, 2, 1, 3).reshape(b, n, ATTN_INNER)
    attn_out = out @ w_attn_out
    ff_x, gate = jnp.split(ff, 2, axis=-1)
    ff_out = (jax.nn.silu(gate) * ff_x) @ w_ff_out
    return attn_out + ff_out


if __name__ == "__main__":
    key = jax.random.PRNGKey(0)
    kx, kf, ko, kff = jax.random.split(key, 4)

    x = jax.random.normal(kx, (BATCH, SEQ, DIM), dtype=jnp.float32)
    gamma = jnp.ones((DIM,), dtype=jnp.float32)                    # LayerNorm gamma init
    w_fused = jax.random.normal(kf, (DIM, FUSED), dtype=jnp.float32) * 0.05
    w_attn_out = jax.random.normal(ko, (ATTN_INNER, DIM), dtype=jnp.float32) * 0.05
    w_ff_out = jax.random.normal(kff, (FF_INNER, DIM), dtype=jnp.float32) * 0.05

    y = parallel_transformer_block(x, gamma, w_fused, w_attn_out, w_ff_out)
    y = jax.block_until_ready(y)

    y_ref = reference(x, gamma, w_fused, w_attn_out, w_ff_out)
    np.testing.assert_allclose(np.asarray(y), np.asarray(y_ref), rtol=1e-3, atol=1e-3)

    print("KERNEL_OK")
</pallas_src>

<mosaic_0001>
module attributes {stable_mosaic.version = 11 : i64} {
  func.func @parallel_block_kernel(%arg0: memref<16x32xf32, #tpu.memory_space<vmem>>, %arg1: memref<32x352xf32, #tpu.memory_space<vmem>>, %arg2: memref<64x16xf32, #tpu.memory_space<vmem>>, %arg3: memref<64x16xf32, #tpu.memory_space<vmem>>, %arg4: memref<16x16xf32, #tpu.memory_space<vmem>>, %arg5: memref<16x16xf32, #tpu.memory_space<vmem>>, %arg6: memref<64x16xf32, #tpu.memory_space<vmem>>, %arg7: memref<64x32xf32, #tpu.memory_space<vmem>>, %arg8: memref<128x32xf32, #tpu.memory_space<vmem>>, %arg9: memref<16x32xf32, #tpu.memory_space<vmem>>) attributes {dimension_semantics = [], scalar_prefetch = 0 : i64, scratch_operands = 0 : i64, tpu.core_type = #tpu.core_type<tc>} {
    %c0 = arith.constant 0 : index
    %c0_0 = arith.constant 0 : index
    %0 = vector.load %arg0[%c0, %c0_0] : memref<16x32xf32, #tpu.memory_space<vmem>>, vector<16x32xf32>
    %cst = arith.constant dense<0.000000e+00> : vector<16xf32>
    %1 = vector.multi_reduction <add>, %0, %cst [1] : vector<16x32xf32> to vector<16xf32>
    %2 = vector.shape_cast %1 : vector<16xf32> to vector<16x1xf32>
    %cst_1 = arith.constant 3.200000e+01 : f32
    %3 = vector.broadcast %cst_1 : f32 to vector<16x1xf32>
    %4 = arith.divf %2, %3 : vector<16x1xf32>
    %5 = vector.broadcast %4 : vector<16x1xf32> to vector<16x32xf32>
    %6 = arith.subf %0, %5 : vector<16x32xf32>
    %7 = arith.mulf %6, %6 : vector<16x32xf32>
    %cst_2 = arith.constant dense<0.000000e+00> : vector<16xf32>
    %8 = vector.multi_reduction <add>, %7, %cst_2 [1] : vector<16x32xf32> to vector<16xf32>
    %9 = vector.shape_cast %8 : vector<16xf32> to vector<16x1xf32>
    %cst_3 = arith.constant 3.200000e+01 : f32
    %10 = vector.broadcast %cst_3 : f32 to vector<16x1xf32>
    %11 = arith.divf %9, %10 : vector<16x1xf32>
    %12 = vector.broadcast %4 : vector<16x1xf32> to vector<16x32xf32>
    %13 = arith.subf %0, %12 : vector<16x32xf32>
    %cst_4 = arith.constant 9.99999974E-6 : f32
    %14 = vector.broadcast %cst_4 : f32 to vector<16x1xf32>
    %15 = arith.addf %11, %14 : vector<16x1xf32>
    %16 = math.rsqrt %15 : vector<16x1xf32>
    %17 = vector.broadcast %16 : vector<16x1xf32> to vector<16x32xf32>
    %18 = arith.mulf %13, %17 : vector<16x32xf32>
    %c0_5 = arith.constant 0 : index
    %c0_6 = arith.constant 0 : index
    %19 = vector.load %arg1[%c0_5, %c0_6] : memref<32x352xf32, #tpu.memory_space<vmem>>, vector<32x352xf32>
    %cst_7 = arith.constant dense<0.000000e+00> : vector<16x352xf32>
    %20 = tpu.matmul %18, %19, %cst_7 {dimension_numbers = #tpu.dot_dimension_numbers<[1], [0], [0], [1], [0, 0, 1, 1], [], []>} : vector<16x32xf32>, vector<32x352xf32>, vector<16x352xf32> -> vector<16x352xf32>
    %21 = vector.extract_strided_slice %20 {offsets = [0, 0], sizes = [16, 128], strides = [1, 1]} : vector<16x352xf32> to vector<16x128xf32>
    %22 = vector.extract_strided_slice %20 {offsets = [0, 128], sizes = [16, 128], strides = [1, 1]} : vector<16x352xf32> to vector<16x128xf32>
    %23 = vector.extract_strided_slice %20 {offsets = [0, 256], sizes = [16, 64], strides = [1, 1]} : vector<16x352xf32> to vector<16x64xf32>
    %24 = vector.extract_strided_slice %20 {offsets = [0, 320], sizes = [16, 16], strides = [1, 1]} : vector<16x352xf32> to vector<16x16xf32>
    %25 = vector.extract_strided_slice %20 {offsets = [0, 336], sizes = [16, 16], strides = [1, 1]} : vector<16x352xf32> to vector<16x16xf32>
    %26 = vector.extract_strided_slice %23 {offsets = [0, 0], sizes = [16, 16], strides = [1, 1]} : vector<16x64xf32> to vector<16x16xf32>
    %27 = vector.extract_strided_slice %23 {offsets = [0, 16], sizes = [16, 16], strides = [1, 1]} : vector<16x64xf32> to vector<16x16xf32>
    %28 = vector.extract_strided_slice %23 {offsets = [0, 32], sizes = [16, 16], strides = [1, 1]} : vector<16x64xf32> to vector<16x16xf32>
    %29 = vector.extract_strided_slice %23 {offsets = [0, 48], sizes = [16, 16], strides = [1, 1]} : vector<16x64xf32> to vector<16x16xf32>
    %30 = tpu.concatenate %26, %27, %28, %29 in 0 : vector<16x16xf32>, vector<16x16xf32>, vector<16x16xf32>, vector<16x16xf32> -> vector<64x16xf32>
    %c0_8 = arith.constant 0 : index
    %c0_9 = arith.constant 0 : index
    %31 = vector.load %arg2[%c0_8, %c0_9] : memref<64x16xf32, #tpu.memory_space<vmem>>, vector<64x16xf32>
    %c0_10 = arith.constant 0 : index
    %c0_11 = arith.constant 0 : index
    %32 = vector.load %arg3[%c0_10, %c0_11] : memref<64x16xf32, #tpu.memory_space<vmem>>, vector<64x16xf32>
    %33 = vector.extract_strided_slice %30 {offsets = [0, 8], sizes = [64, 8], strides = [1, 1]} : vector<64x16xf32> to vector<64x8xf32>
    %34 = vector.extract_strided_slice %30 {offsets = [0, 0], sizes = [64, 8], strides = [1, 1]} : vector<64x16xf32> to vector<64x8xf32>
    %35 = tpu.concatenate %33, %34 in 1 : vector<64x8xf32>, vector<64x8xf32> -> vector<64x16xf32>
    %36 = arith.mulf %30, %31 : vector<64x16xf32>
    %37 = arith.mulf %35, %32 : vector<64x16xf32>
    %38 = arith.addf %36, %37 : vector<64x16xf32>
    %c0_12 = arith.constant 0 : index
    %c0_13 = arith.constant 0 : index
    %39 = vector.load %arg4[%c0_12, %c0_13] : memref<16x16xf32, #tpu.memory_space<vmem>>, vector<16x16xf32>
    %c0_14 = arith.constant 0 : index
    %c0_15 = arith.constant 0 : index
    %40 = vector.load %arg5[%c0_14, %c0_15] : memref<16x16xf32, #tpu.memory_space<vmem>>, vector<16x16xf32>
    %41 = vector.extract_strided_slice %24 {offsets = [0, 8], sizes = [16, 8], strides = [1, 1]} : vector<16x16xf32> to vector<16x8xf32>
    %42 = vector.extract_strided_slice %24 {offsets = [0, 0], sizes = [16, 8], strides = [1, 1]} : vector<16x16xf32> to vector<16x8xf32>
    %43 = tpu.concatenate %41, %42 in 1 : vector<16x8xf32>, vector<16x8xf32> -> vector<16x16xf32>
    %44 = arith.mulf %24, %39 : vector<16x16xf32>
    %45 = arith.mulf %43, %40 : vector<16x16xf32>
    %46 = arith.addf %44, %45 : vector<16x16xf32>
    %47 = tpu.transpose %46, [1, 0] : vector<16x16xf32> -> vector<16x16xf32>
    %cst_16 = arith.constant dense<0.000000e+00> : vector<64x16xf32>
    %48 = tpu.matmul %38, %47, %cst_16 {dimension_numbers = #tpu.dot_dimension_numbers<[1], [0], [0], [1], [0, 0, 1, 1], [], []>} : vector<64x16xf32>, vector<16x16xf32>, vector<64x16xf32> -> vector<64x16xf32>
    %c0_17 = arith.constant 0 : index
    %c0_18 = arith.constant 0 : index
    %49 = vector.load %arg6[%c0_17, %c0_18] : memref<64x16xf32, #tpu.memory_space<vmem>>, vector<64x16xf32>
    %50 = arith.addf %48, %49 : vector<64x16xf32>
    %cst_19 = arith.constant dense<0xFF800000> : vector<64xf32>
    %51 = vector.multi_reduction <maximumf>, %50, %cst_19 [1] : vector<64x16xf32> to vector<64xf32>
    %52 = vector.shape_cast %51 : vector<64xf32> to vector<64x1xf32>
    %53 = vector.broadcast %52 : vector<64x1xf32> to vector<64x16xf32>
    %54 = arith.subf %50, %53 : vector<64x16xf32>
    %55 = math.exp %54 : vector<64x16xf32>
    %cst_20 = arith.constant dense<0.000000e+00> : vector<64xf32>
    %56 = vector.multi_reduction <add>, %55, %cst_20 [1] : vector<64x16xf32> to vector<64xf32>
    %57 = vector.shape_cast %56 : vector<64xf32> to vector<64x1xf32>
    %cst_21 = arith.constant dense<0.000000e+00> : vector<64x16xf32>
    %58 = tpu.matmul %55, %25, %cst_21 {dimension_numbers = #tpu.dot_dimension_numbers<[1], [0], [0], [1], [0, 0, 1, 1], [], []>} : vector<64x16xf32>, vector<16x16xf32>, vector<64x16xf32> -> vector<64x16xf32>
    %59 = tpu.reciprocal %57 {approx = true} : vector<64x1xf32> -> vector<64x1xf32>
    %60 = vector.broadcast %59 : vector<64x1xf32> to vector<64x16xf32>
    %61 = arith.mulf %58, %60 : vector<64x16xf32>
    %62 = vector.extract_strided_slice %61 {offsets = [0, 0], sizes = [16, 16], strides = [1, 1]} : vector<64x16xf32> to vector<16x16xf32>
    %63 = vector.extract_strided_slice %61 {offsets = [16, 0], sizes = [16, 16], strides = [1, 1]} : vector<64x16xf32> to vector<16x16xf32>
    %64 = vector.extract_strided_slice %61 {offsets = [32, 0], sizes = [16, 16], strides = [1, 1]} : vector<64x16xf32> to vector<16x16xf32>
    %65 = vector.extract_strided_slice %61 {offsets = [48, 0], sizes = [16, 16], strides = [1, 1]} : vector<64x16xf32> to vector<16x16xf32>
    %66 = tpu.concatenate %62, %63, %64, %65 in 1 : vector<16x16xf32>, vector<16x16xf32>, vector<16x16xf32>, vector<16x16xf32> -> vector<16x64xf32>
    %c0_22 = arith.constant 0 : index
    %c0_23 = arith.constant 0 : index
    %67 = vector.load %arg7[%c0_22, %c0_23] : memref<64x32xf32, #tpu.memory_space<vmem>>, vector<64x32xf32>
    %cst_24 = arith.constant dense<0.000000e+00> : vector<16x32xf32>
    %68 = tpu.matmul %66, %67, %cst_24 {dimension_numbers = #tpu.dot_dimension_numbers<[1], [0], [0], [1], [0, 0, 1, 1], [], []>} : vector<16x64xf32>, vector<64x32xf32>, vector<16x32xf32> -> vector<16x32xf32>
    %69 = arith.negf %22 : vector<16x128xf32>
    %70 = math.exp %69 : vector<16x128xf32>
    %cst_25 = arith.constant 1.000000e+00 : f32
    %71 = vector.broadcast %cst_25 : f32 to vector<16x128xf32>
    %72 = arith.addf %71, %70 : vector<16x128xf32>
    %73 = arith.divf %71, %72 : vector<16x128xf32>
    %74 = arith.mulf %22, %73 : vector<16x128xf32>
    %75 = arith.mulf %21, %74 : vector<16x128xf32>
    %c0_26 = arith.constant 0 : index
    %c0_27 = arith.constant 0 : index
    %76 = vector.load %arg8[%c0_26, %c0_27] : memref<128x32xf32, #tpu.memory_space<vmem>>, vector<128x32xf32>
    %cst_28 = arith.constant dense<0.000000e+00> : vector<16x32xf32>
    %77 = tpu.matmul %75, %76, %cst_28 {dimension_numbers = #tpu.dot_dimension_numbers<[1], [0], [0], [1], [0, 0, 1, 1], [], []>} : vector<16x128xf32>, vector<128x32xf32>, vector<16x32xf32> -> vector<16x32xf32>
    %78 = arith.addf %68, %77 : vector<16x32xf32>
    %c0_29 = arith.constant 0 : index
    %c0_30 = arith.constant 0 : index
    %79 = vector.load %arg9[%c0_29, %c0_30] : memref<16x32xf32, #tpu.memory_space<vmem>>, vector<16x32xf32>
    tpu.vector_store %arg9[%c0_29, %c0_30], %78 {strides = array<i32>} : memref<16x32xf32, #tpu.memory_space<vmem>>, vector<16x32xf32>,
    return
  }
}

</mosaic_0001>

<bundles_post_ra>
// kernel: tpu_custom_call.1
= control target key start
LH: loop header
LB: loop body
LE: loop exit
PB: predicated region body
PF: predicated region fallthrough
CT: control target
= control target key end

     0   :  { %vm35_vm0 = vcmask 261120   ;;  %s1258_s0 = inlined_call_operand.vmem [shape: f32[16,32], index: 0, kind: input, shape index: {}]   ;;  %s1259_s1 = inlined_call_operand.vmem [shape: f32[32,352], index: 1, kind: input, shape index: {}]   ;;  %s1260_s2 = inlined_call_operand.vmem [shape: f32[64,16], index: 2, kind: input, shape index: {}]   ;;  %s1261_s3 = inlined_call_operand.vmem [shape: f32[64,16], index: 3, kind: input, shape index: {}]   ;;  %s1262_s4 = inlined_call_operand.vmem [shape: f32[16,16], index: 4, kind: input, shape index: {}]   ;;  %s1263_s5 = inlined_call_operand.vmem [shape: f32[16,16], index: 5, kind: input, shape index: {}]   ;;  %s1264_s6 = inlined_call_operand.vmem [shape: f32[64,16], index: 6, kind: input, shape index: {}]   ;;  %s1265_s7 = inlined_call_operand.vmem [shape: f32[64,32], index: 7, kind: input, shape index: {}]   ;;  %s1266_s8 = inlined_call_operand.vmem [shape: f32[128,32], index: 8, kind: input, shape index: {}]   ;;  %s1267_s9 = inlined_call_operand.hbm [shape: f32[16,32], index: 9, kind: output, shape index: {}]  }
   0x1   :  { %v33_v0 = vld [vmem:[%s1258_s0] sm:$0xff] }
   0x2   :  { %14 = vsyncpa [#allocation3], 0  ;;  %v36_v1 = vsel %vm35_vm0, %v33_v0, 0.0  ;;  %v34_v2 = vld [vmem:[%s1258_s0 + $0x8] sm:$0xff]  ;;  %v865_v4 = vmov 32.0   ;;  %v97_v22 = vld [vmem:[%s1259_s1 + $0x50] sm:$0xff] }
   0x3   :  { %37 = vadd.xlane.f32.xlu0 %v36_v1  ;;  %v39_v3 = vsel %vm35_vm0, %v34_v2, 0.0  ;;  %793 = vrcp.f32 %v865_v4  ;;  %v96_v21 = vld [vmem:[%s1259_s1 + $0x48] sm:$0xff]  ;;  %v98_v23 = vld [vmem:[%s1259_s1 + $0x58] sm:$0xff]  ;;  %140 = vmatpush.msra.mxu1 %v97_v22  ;;  %v93_v24 = vld [vmem:[%s1259_s1 + $0x30] sm:$0xff]  ;;  %s866_s22 = smov 56   ;;  %s867_s23 = smov 72  }
   0x4   :  { %117 = vmatpush.msra.mxu0 %v96_v21  ;;  %163 = vmatpush.msra.mxu2 %v98_v23  ;;  %v94_v25 = vld [vmem:[%s1259_s1 + $0x38] sm:$0xff]  ;;  %v95_v26 = vld [vmem:[%s1259_s1 + $0x40] sm:$0xff]  ;;  %v92_v29 = vld [vmem:[%s1259_s1 + $0x28] sm:$0xff]  ;;  %s869_s24 = smov 120   ;;  %s870_s27 = smov 64  }
   0x5   :  { %141 = vmatpush.msra.mxu1 %v94_v25  ;;  %v90_v27 = vld [vmem:[%s1259_s1 + $0x18] sm:$0xff]  ;;  %v91_v28 = vld [vmem:[%s1259_s1 + $0x20] sm:$0xff]  ;;  %v88_v31 = vld [vmem:[%s1259_s1 + $0x8] sm:$0xff]  ;;  %s871_s0 = smov 96   ;;  %s872_s13 = smov 8  }
   0x6   :  { %118 = vmatpush.msra.mxu0 %v93_v24  ;;  %164 = vmatpush.msra.mxu2 %v95_v26  ;;  %v87_v30 = vld [vmem:[%s1259_s1] sm:$0xff]  ;;  %v89_v32 = vld [vmem:[%s1259_s1 + $0x10] sm:$0xff]  ;;  %v670_v55 = vld [vmem:[%s1266_s8 + $0x78] sm:$0xff]  ;;  %s878_s28 = smov 128  }
   0x7   :  { %142 = vmatpush.msra.mxu1 %v91_v28  ;;  %v669_v56 = vld [vmem:[%s1266_s8 + $0x70] sm:$0xff]  ;;  %v668_v57 = vld [vmem:[%s1266_s8 + $0x68] sm:$0xff]  ;;  %v667_v58 = vld [vmem:[%s1266_s8 + $0x60] sm:$0xff] }
   0x8   :  { %119 = vmatpush.msra.mxu0 %v90_v27  ;;  %165 = vmatpush.msra.mxu2 %v92_v29  ;;  %v666_v59 = vld [vmem:[%s1266_s8 + $0x58] sm:$0xff]  ;;  %v665_v60 = vld [vmem:[%s1266_s8 + $0x50] sm:$0xff]  ;;  %v664_v61 = vld [vmem:[%s1266_s8 + $0x48] sm:$0xff] }
   0x9   :  { %v794_v5 = vpop.eup %793  ;;  %143 = vmatpush.msra.mxu1 %v88_v31  ;;  %v663_v62 = vld [vmem:[%s1266_s8 + $0x40] sm:$0xff]  ;;  %v662_v63 = vld [vmem:[%s1266_s8 + $0x38] sm:$0xff]  ;;  %v660_v1 = vld [vmem:[%s1266_s8 + $0x28] sm:$0xff] }
   0xa   :  { %v43_v6 = vmul.f32 32.0, %v794_v5  ;;  %vm47_vm1 = vweird.f32 %v794_v5  ;;  %120 = vmatpush.msra.mxu0 %v87_v30  ;;  %166 = vmatpush.msra.mxu2 %v89_v32  ;;  %v657_v4 = vld [vmem:[%s1266_s8 + $0x10] sm:$0xff]  ;;  %v292_v32 = vld [vmem:[%s1262_s4 + $0x8] sm:$0xff] }
   0xb   :  { %40 = vadd.xlane.f32.xlu0 %v39_v3  ;;  %671 = vmatpush.msrb.mxu1 %v670_v55  ;;  %v658_v3 = vld [vmem:[%s1266_s8 + $0x18] sm:$0xff] }
   0xc   :  { %v44_v7 = vsub.f32 1.0, %v43_v6 }
   0xd   :  { %672 = vmatpush.msrb.mxu1 %v669_v56 }
   0xe   :  { %v45_v8 = vmul.f32 %v794_v5, %v44_v7  ;;  %v655_v7 = vld [vmem:[%s1266_s8] sm:$0xff] }
   0xf   :  { %673 = vmatpush.msrb.mxu1 %v668_v57 }
  0x10   :  { %v46_v9 = vadd.f32 %v794_v5, %v45_v8 }
  0x11   :  { %674 = vmatpush.msrb.mxu1 %v667_v58 }
  0x12   :  { %v48_v10 = vsel %vm47_vm1, %v794_v5, %v46_v9  ;;  %v656_v5 = vld [vmem:[%s1266_s8 + $0x8] sm:$0xff]  ;;  %vm258_vm1 = vcmask 64512  }
  0x13   :  { %675 = vmatpush.msrb.mxu1 %v666_v59 }
  0x15   :  { %676 = vmatpush.msrb.mxu1 %v665_v60 }
  0x17   :  { %677 = vmatpush.msrb.mxu1 %v664_v61 }
  0x19   :  { %678 = vmatpush.msrb.mxu1 %v663_v62 }
  0x1b   :  { %679 = vmatpush.msrb.mxu1 %v662_v63 }
  0x76   :  { %v38_v11 = vpop.xlane.xlu0 %37 }
  0x77   :  { %v49_v12 = vmul.f32 %v48_v10, %v38_v11 }
  0x79   :  { %v51_v13 = vsub.f32 %v33_v0, %v49_v12  ;;  %v661_v0 = vld [vmem:[%s1266_s8 + $0x30] sm:$0xff] }
  0x7a   :  { %680 = vmatpush.msrb.mxu1 %v661_v0 }
  0x7b   :  { %v53_v14 = vmul.f32 %v51_v13, %v51_v13 }
  0x7c   :  { %681 = vmatpush.msrb.mxu1 %v660_v1 }
  0x7d   :  { %v55_v15 = vsel %vm35_vm0, %v53_v14, 0.0 }
  0x7e   :  { %56 = vadd.xlane.f32.xlu1 %v55_v15  ;;  %v41_v16 = vpop.xlane.xlu0 %40 }
  0x7f   :  { %v50_v17 = vmul.f32 %v48_v10, %v41_v16 }
  0x81   :  { %v52_v18 = vsub.f32 %v34_v2, %v50_v17  ;;  %v659_v2 = vld [vmem:[%s1266_s8 + $0x20] sm:$0xff]  ;;  %s868_s8 = smov 112  }
  0x82   :  { %682 = vmatpush.msrb.mxu1 %v659_v2 }
  0x83   :  { %v54_v19 = vmul.f32 %v52_v18, %v52_v18 }
  0x84   :  { %683 = vmatpush.msrb.mxu1 %v658_v3 }
  0x85   :  { %v58_v20 = vsel %vm35_vm0, %v54_v19, 0.0 }
  0x86   :  { %59 = vadd.xlane.f32.xlu1 %v58_v20  ;;  %684 = vmatpush.msrb.mxu1 %v657_v4 }
  0x88   :  { %685 = vmatpush.msrb.mxu1 %v656_v5 }
  0x8a   :  { %686 = vmatpush.msrb.mxu1 %v655_v7 }
  0xf1   :  { %v57_v33 = vpop.xlane.xlu1 %56 }
  0xf2   :  { %v61_v34 = vmul.f32 %v57_v33, %v48_v10 }
  0xf4   :  { %v63_v35 = vadd.f32 1e-05, %v61_v34 }
  0xf6   :  { %795 = vrsqrt.f32 %v63_v35  ;;  %vm71_vm3 = vweird.f32 %v63_v35 }
  0xf9   :  { %v60_v36 = vpop.xlane.xlu1 %59 }
  0xfa   :  { %v62_v37 = vmul.f32 %v60_v36, %v48_v10 }
  0xfc   :  { %v796_v38 = vpop.eup %795  ;;  %v64_v39 = vadd.f32 1e-05, %v62_v37 }
  0xfd   :  { %v66_v40 = vmul.f32 %v796_v38, %v63_v35  ;;  %vm72_vm2 = vweird.f32 %v796_v38 }
  0xfe   :  { %797 = vrsqrt.f32 %v64_v39  ;;  %vm73_vm4 = vmor %vm71_vm3, %vm72_vm2  ;;  %vm81_vm5 = vweird.f32 %v64_v39  ;;  %vm345_vm2 = vcmask 130048   ;;  %vm602_vm3 = vcmask 392192  }
  0xff   :  { %v67_v41 = vmul.f32 %v796_v38, %v66_v40 }
 0x101   :  { %v68_v42 = vmul.f32 0.5, %v67_v41 }
 0x103   :  { %v69_v43 = vsub.f32 1.5, %v68_v42 }
 0x104   :  { %v798_v44 = vpop.eup %797 }
 0x105   :  { %v76_v45 = vmul.f32 %v798_v44, %v64_v39  ;;  %v70_v46 = vmul.f32 %v796_v38, %v69_v43  ;;  %vm82_vm6 = vweird.f32 %v798_v44 }
 0x106   :  { %vm83_vm7 = vmor %vm81_vm5, %vm82_vm6 }
 0x107   :  { %v77_v47 = vmul.f32 %v798_v44, %v76_v45  ;;  %v74_v48 = vsel %vm73_vm4, %v796_v38, %v70_v46  ;;  %v294_v45 = vld [vmem:[%s1263_s5 + $0x8] sm:$0xff]  ;;  %vm694_vm4 = vcmask 523264  }
 0x108   :  { %v85_v49 = vmul.f32 %v74_v48, %v51_v13 }
 0x109   :  { %v78_v50 = vmul.f32 0.5, %v77_v47 }
 0x10a   :  { %744 = vmatmul.msk.f32.vlgmr.msra.gmra.mxu0 %vm35_vm0, %v85_v49  ;;  %746 = vmatmul.msk.f32.vlgmr.msra.gmra.mxu1 %vm35_vm0, %v85_v49 }
 0x10b   :  { %v79_v51 = vsub.f32 1.5, %v78_v50  ;;  %748 = vmatmul.msk.f32.vlgmr.msra.gmra.mxu2 %vm35_vm0, %v85_v49  ;;  %v293_v50 = vld [vmem:[%s1263_s5] sm:$0xff] }
 0x10d   :  { %v80_v52 = vmul.f32 %v798_v44, %v79_v51 }
 0x10f   :  { %v84_v53 = vsel %vm83_vm7, %v798_v44, %v80_v52  ;;  %v291_v52 = vld [vmem:[%s1262_s4] sm:$0xff]  ;;  %s873_s4 = smov 80  }
 0x110   :  { %v86_v54 = vmul.f32 %v84_v53, %v52_v18 }
 0x112   :  { %745 = vmatmul.msk.f32.gmra.mxu0 %vm35_vm0, %v86_v54  ;;  %747 = vmatmul.msk.f32.gmra.mxu1 %vm35_vm0, %v86_v54 }
 0x113   :  { %749 = vmatmul.msk.f32.gmra.mxu2 %vm35_vm0, %v86_v54 }
 0x187   :  { %v145_v6 = vpop.f32.mrf.mxu1  ;;  %v122_v28 = vpop.f32.mrf.mxu0 }
 0x188   :  { %v768_v8 = vmul.f32 -1.442695, %v145_v6 }
 0x18a   :  { %799 = vpow2.f32 %v768_v8  ;;  %v194_v8 = vld [vmem:[%s1260_s2] sm:$0xff] }
 0x18e   :  { %v1029_v9 = vpop.f32.mrf.mxu2 }
 0x18f   :  { %295 = vrot.lane.b32.xlu0 %v1029_v9, %s866_s22  ;;  %301 = vrot.lane.b32.xlu1 %v1029_v9, %s867_s23  ;;  %v148_v10 = vpop.f32.mrf.mxu1  ;;  %v125_v42 = vpop.f32.mrf.mxu0 }
 0x190   :  { %v800_v11 = vpop.eup %799  ;;  %v769_v12 = vmul.f32 -1.442695, %v148_v10 }
 0x191   :  { %v619_v13 = vadd.f32 1.0, %v800_v11 }
 0x192   :  { %801 = vpow2.f32 %v769_v12 }
 0x193   :  { %803 = vrcp.f32 %v619_v13  ;;  %v632_v20 = vand.u32 2147483648, %v619_v13  ;;  %v630_v22 = vand.u32 2147483647, %v619_v13  ;;  %vm626_vm9 = vweird.f32 %v619_v13 }
 0x195   :  { %v633_v25 = vor.u32 1.1754944e-38, %v632_v20  ;;  %vm631_vm11 = vcmp.eq.f32.partialorder %v630_v22, 8.507059e+37 }
 0x196   :  { %v1033_v14 = vpop.f32.mrf.mxu2 }
 0x197   :  { %178 = vrot.lane.b32.xlu1 %v1033_v14, %s868_s8  ;;  %297 = vrot.lane.b32.xlu2 %v1033_v14, %s866_s22 }
 0x198   :  { %v802_v15 = vpop.eup %801 }
 0x199   :  { %v804_v16 = vpop.eup %803  ;;  %v620_v17 = vadd.f32 1.0, %v802_v15  ;;  %v267_v15 = vmul.f32 %v194_v8, %v1029_v9 }
 0x19a   :  { %v622_v18 = vmul.f32 %v804_v16, %v619_v13  ;;  %vm627_vm8 = vweird.f32 %v804_v16 }
 0x19b   :  { %805 = vrcp.f32 %v620_v17  ;;  %vm628_vm10 = vmor %vm626_vm9, %vm627_vm8  ;;  %v647_v33 = vand.u32 2147483648, %v620_v17  ;;  %v645_v36 = vand.u32 2147483647, %v620_v17  ;;  %vm641_vm13 = vweird.f32 %v620_v17 }
 0x19c   :  { %v623_v19 = vsub.f32 1.0, %v622_v18 }
 0x19d   :  { %v648_v38 = vor.u32 1.1754944e-38, %v647_v33  ;;  %vm646_vm15 = vcmp.eq.f32.partialorder %v645_v36, 8.507059e+37 }
 0x19e   :  { %v624_v21 = vmul.f32 %v804_v16, %v623_v19  ;;  %v195_v19 = vld [vmem:[%s1260_s2 + $0x8] sm:$0xff] }
 0x19f   :  { %210 = vrot.lane.b32.xlu1 %v1029_v9, %s869_s24  ;;  %303 = vrot.lane.b32.xlu2 %v1033_v14, %s867_s23 }
 0x1a0   :  { %v625_v23 = vadd.f32 %v804_v16, %v624_v21 }
 0x1a1   :  { %v806_v24 = vpop.eup %805 }
 0x1a2   :  { %v629_v26 = vsel %vm628_vm10, %v804_v16, %v625_v23  ;;  %v637_v27 = vmul.f32 %v806_v24, %v620_v17  ;;  %vm642_vm12 = vweird.f32 %v806_v24  ;;  %v203_v17 = vld [vmem:[%s1261_s3 + $0x8] sm:$0xff] }
 0x1a3   :  { %v634_v29 = vsel %vm631_vm11, %v633_v25, %v629_v26  ;;  %vm643_vm14 = vmor %vm641_vm13, %vm642_vm12  ;;  %v204_v26 = vld [vmem:[%s1261_s3 + $0x10] sm:$0xff] }
 0x1a4   :  { %v651_v30 = vmul.f32 %v634_v29, %v145_v6  ;;  %v638_v31 = vsub.f32 1.0, %v637_v27  ;;  %v202_v6 = vld [vmem:[%s1261_s3] sm:$0xff] }
 0x1a6   :  { %v653_v34 = vmul.f32 %v651_v30, %v122_v28  ;;  %v639_v35 = vmul.f32 %v806_v24, %v638_v31  ;;  %v196_v28 = vld [vmem:[%s1260_s2 + $0x10] sm:$0xff] }
 0x1a7   :  { %313 = vrot.lane.b32.xlu2 %v292_v32, %s870_s27 }
 0x1a8   :  { %v640_v37 = vadd.f32 %v806_v24, %v639_v35  ;;  %687 = vmatmul.f32.vlgmr.msrb.gmra.mxu1 %v653_v34  ;;  %v205_v35 = vld [vmem:[%s1261_s3 + $0x18] sm:$0xff] }
 0x1aa   :  { %v644_v39 = vsel %vm643_vm14, %v806_v24, %v640_v37  ;;  %v268_v24 = vmul.f32 %v195_v19, %v1033_v14  ;;  %v197_v37 = vld [vmem:[%s1260_s2 + $0x18] sm:$0xff] }
 0x1ab   :  { %v649_v40 = vsel %vm646_vm15, %v648_v38, %v644_v39  ;;  %v788_v39 = vpack.i.bf16 %v1029_v9, %v1033_v14 }
 0x1ac   :  { %v652_v41 = vmul.f32 %v649_v40, %v148_v10 }
 0x1ae   :  { %v654_v43 = vmul.f32 %v652_v41, %v125_v42 }
 0x1b0   :  { %690 = vmatmul.f32.gmra.mxu1 %v654_v43 }
 0x1f1   :  { %v298_v44 = vpop.permute.xlu2 %297 }
 0x1f9   :  { %v304_v46 = vpop.permute.xlu2 %303 }
 0x1fa   :  { %v308_v47 = vsel %vm258_vm1, %v298_v44, %v304_v46  ;;  %v206_v44 = vld [vmem:[%s1261_s3 + $0x20] sm:$0xff] }
 0x1fb   :  { %v320_v48 = vmul.f32 %v308_v47, %v294_v45  ;;  %v198_v46 = vld [vmem:[%s1260_s2 + $0x20] sm:$0xff] }
 0x1fd   :  { %325 = vrot.lane.b32.xlu2 %v320_v48, %s870_s27  ;;  %v199_v48 = vld [vmem:[%s1260_s2 + $0x28] sm:$0xff] }
 0x201   :  { %v302_v49 = vpop.permute.xlu1 %301  ;;  %v296_v51 = vpop.permute.xlu0 %295 }
 0x202   :  { %v307_v53 = vsel %vm258_vm1, %v296_v51, %v302_v49  ;;  %v314_v55 = vpop.permute.xlu2 %313  ;;  %v207_v49 = vld [vmem:[%s1261_s3 + $0x28] sm:$0xff] }
 0x203   :  { %v319_v54 = vmul.f32 %v307_v53, %v293_v50  ;;  %v318_v56 = vmul.f32 %v314_v55, %v1033_v14 }
 0x205   :  { %311 = vrot.lane.b32.xlu2 %v291_v52, %s870_s27  ;;  %323 = vrot.lane.b32.xlu0 %v319_v54, %s870_s27 }
 0x209   :  { %v179_v61 = vpop.permute.xlu1 %178 }
 0x20a   :  { %v270_v40 = vmul.f32 %v197_v37, %v179_v61 }
 0x20d   :  { %176 = vrot.lane.b32.xlu2 %v1029_v9, %s868_s8  ;;  %182 = vrot.lane.b32.xlu0 %v1029_v9, %s871_s0 }
 0x211   :  { %v211_v5 = vpop.permute.xlu1 %210 }
 0x215   :  { %234 = vrot.lane.b32.xlu0 %v1029_v9, %s872_s13 }
 0x21d   :  { %212 = vrot.lane.b32.xlu0 %v1033_v14, %s869_s24 }
 0x257   :  { %v326_v57 = vpop.permute.xlu2 %325 }
 0x258   :  { %v330_v58 = vadd.f32 %v326_v57, %v318_v56  ;;  %v200_v56 = vld [vmem:[%s1260_s2 + $0x30] sm:$0xff] }
 0x259   :  { %v208_v57 = vld [vmem:[%s1261_s3 + $0x30] sm:$0xff] }
 0x25a   :  { %343 = vrot.lane.b32.xlu2 %v330_v58, %s870_s27 }
 0x25f   :  { %v312_v59 = vpop.permute.xlu2 %311 }
 0x260   :  { %v317_v62 = vmul.f32 %v312_v59, %v1029_v9 }
 0x262   :  { %184 = vrot.lane.b32.xlu2 %v1033_v14, %s871_s0  ;;  %s876_s0 = smov 32  }
 0x267   :  { %v177_v60 = vpop.permute.xlu2 %176 }
 0x268   :  { %214 = vrot.lane.b32.xlu0 %v177_v60, %s869_s24  ;;  %v269_v30 = vmul.f32 %v196_v28, %v177_v60 }
 0x26a   :  { %236 = vrot.lane.b32.xlu2 %v1033_v14, %s872_s13 }
 0x270   :  { %216 = vrot.lane.b32.xlu0 %v179_v61, %s869_s24 }
 0x272   :  { %238 = vrot.lane.b32.xlu2 %v177_v60, %s872_s13 }
 0x277   :  { %v324_v63 = vpop.permute.xlu0 %323 }
 0x278   :  { %v329_v0 = vadd.f32 %v324_v63, %v317_v62 }
 0x27a   :  { %240 = vrot.lane.b32.xlu2 %v179_v61, %s872_s13  ;;  %341 = vrot.lane.b32.xlu1 %v329_v0, %s870_s27  ;;  %v201_v0 = vld [vmem:[%s1260_s2 + $0x38] sm:$0xff]  ;;  %s732_s27 = sshll.u32 %s1267_s9, 4  ;;  %s733_s27 = int_to_ptr.hbm [resolvable:$true] %s732_s27 }
 0x27f   :  { %v1077_v1 = vpop.permute.xlu0 %182 }
 0x280   :  { %242 = vrot.lane.b32.xlu0 %v1077_v1, %s872_s13 }
 0x282   :  { %188 = vrot.lane.b32.xlu1 %v1029_v9, %s873_s4 }
 0x287   :  { %v235_v4 = vpop.permute.xlu0 %234 }
 0x288   :  { %v259_v7 = vsel %vm258_vm1, %v211_v5, %v235_v4 }
 0x289   :  { %v275_v10 = vmul.f32 %v259_v7, %v202_v6  ;;  %v331_v7 = vld [vmem:[%s1264_s6] sm:$0xff] }
 0x28a   :  { %190 = vrot.lane.b32.xlu1 %v1033_v14, %s873_s4  ;;  %v271_v14 = vmul.f32 %v198_v46, %v1077_v1 }
 0x28b   :  { %v283_v16 = vadd.f32 %v275_v10, %v267_v15 }
 0x28f   :  { %v213_v11 = vpop.permute.xlu0 %212 }
 0x292   :  { %218 = vrot.lane.b32.xlu1 %v1077_v1, %s869_s24  ;;  %v209_v1 = vld [vmem:[%s1261_s3 + $0x38] sm:$0xff] }
 0x2b4   :  { %v344_v2 = vpop.permute.xlu2 %343 }
 0x2b5   :  { %750 = vmatpush.xpose.msk.msra.mxu3 %vm345_vm2, %v344_v2 }
 0x2bc   :  { %v1086_v3 = vpop.permute.xlu2 %184 }
 0x2bd   :  { %220 = vrot.lane.b32.xlu2 %v1086_v3, %s869_s24  ;;  %244 = vrot.lane.b32.xlu1 %v1086_v3, %s872_s13  ;;  %v272_v53 = vmul.f32 %v199_v48, %v1086_v3 }
 0x2c4   :  { %v237_v12 = vpop.permute.xlu2 %236 }
 0x2c5   :  { %v260_v18 = vsel %vm258_vm1, %v213_v11, %v237_v12 }
 0x2c6   :  { %v276_v20 = vmul.f32 %v260_v18, %v203_v17 }
 0x2c8   :  { %v284_v25 = vadd.f32 %v276_v20, %v268_v24 }
 0x2cc   :  { %v239_v22 = vpop.permute.xlu2 %238 }
 0x2d4   :  { %v241_v33 = vpop.permute.xlu2 %240 }
 0x2da   :  { %v215_v21 = vpop.permute.xlu0 %214 }
 0x2db   :  { %v261_v27 = vsel %vm258_vm1, %v215_v21, %v239_v22  ;;  %v333_v21 = vld [vmem:[%s1264_s6 + $0x10] sm:$0xff] }
 0x2dc   :  { %v277_v29 = vmul.f32 %v261_v27, %v204_v26 }
 0x2de   :  { %v285_v34 = vadd.f32 %v277_v29, %v269_v30  ;;  %v335_v29 = vld [vmem:[%s1264_s6 + $0x20] sm:$0xff] }
 0x2e2   :  { %v217_v31 = vpop.permute.xlu0 %216 }
 0x2e3   :  { %v262_v36 = vsel %vm258_vm1, %v217_v31, %v241_v33  ;;  %v336_v33 = vld [vmem:[%s1264_s6 + $0x28] sm:$0xff] }
 0x2e4   :  { %v278_v38 = vmul.f32 %v262_v36, %v205_v35 }
 0x2e6   :  { %v286_v43 = vadd.f32 %v278_v38, %v270_v40  ;;  %v337_v40 = vld [vmem:[%s1264_s6 + $0x30] sm:$0xff] }
 0x2ec   :  { %v342_v13 = vpop.permute.xlu1 %341 }
 0x2ed   :  { %751 = vmatpush.xpose.msk.msra.mxu3 %vm345_vm2, %v342_v13 }
 0x2f0   :  { %752 = vmatmul.msk.f32.vlgmr.msra.gmra.mxu3 %vm345_vm2, %v283_v16  ;;  %v332_v16 = vld [vmem:[%s1264_s6 + $0x8] sm:$0xff] }
 0x2f2   :  { %v243_v42 = vpop.permute.xlu0 %242 }
 0x2f4   :  { %v189_v23 = vpop.permute.xlu1 %188 }
 0x2f5   :  { %246 = vrot.lane.b32.xlu2 %v189_v23, %s872_s13  ;;  %222 = vrot.lane.b32.xlu0 %v189_v23, %s869_s24  ;;  %v273_v61 = vmul.f32 %v200_v56, %v189_v23 }
 0x2f8   :  { %753 = vmatmul.msk.f32.gmra.mxu3 %vm345_vm2, %v284_v25  ;;  %v334_v25 = vld [vmem:[%s1264_s6 + $0x18] sm:$0xff] }
 0x2fc   :  { %v191_v32 = vpop.permute.xlu1 %190 }
 0x2fd   :  { %248 = vrot.lane.b32.xlu0 %v191_v32, %s872_s13  ;;  %224 = vrot.lane.b32.xlu1 %v191_v32, %s869_s24  ;;  %s874_s24 = smov 48   ;;  %v274_v5 = vmul.f32 %v201_v0, %v191_v32 }
 0x300   :  { %754 = vmatmul.msk.f32.gmra.mxu3 %vm345_vm2, %v285_v34 }
 0x304   :  { %v219_v41 = vpop.permute.xlu1 %218 }
 0x305   :  { %789 = vrot.lane.b32.xlu0 %v788_v39, %s874_s24  ;;  %v263_v45 = vsel %vm258_vm1, %v219_v41, %v243_v42 }
 0x306   :  { %v279_v9 = vmul.f32 %v263_v45, %v206_v44 }
 0x308   :  { %755 = vmatmul.msk.f32.gmra.mxu3 %vm345_vm2, %v286_v43  ;;  %v287_v47 = vadd.f32 %v279_v9, %v271_v14  ;;  %v338_v14 = vld [vmem:[%s1264_s6 + $0x38] sm:$0xff]  ;;  %s875_s6 = smov 16  }
 0x310   :  { %756 = vmatmul.msk.f32.gmra.mxu3 %vm345_vm2, %v287_v47 }
 0x317   :  { %v221_v50 = vpop.permute.xlu2 %220 }
 0x32f   :  { %v245_v51 = vpop.permute.xlu1 %244 }
 0x330   :  { %v264_v52 = vsel %vm258_vm1, %v221_v50, %v245_v51 }
 0x331   :  { %v280_v54 = vmul.f32 %v264_v52, %v207_v49 }
 0x333   :  { %v288_v55 = vadd.f32 %v280_v54, %v272_v53 }
 0x335   :  { %757 = vmatmul.msk.f32.gmra.mxu3 %vm345_vm2, %v288_v55 }
 0x34f   :  { %v247_v58 = vpop.permute.xlu2 %246 }
 0x367   :  { %v223_v59 = vpop.permute.xlu0 %222 }
 0x368   :  { %v265_v60 = vsel %vm258_vm1, %v223_v59, %v247_v58 }
 0x369   :  { %v281_v62 = vmul.f32 %v265_v60, %v208_v57 }
 0x36b   :  { %v289_v63 = vadd.f32 %v281_v62, %v273_v61 }
 0x36d   :  { %758 = vmatmul.msk.f32.gmra.mxu3 %vm345_vm2, %v289_v63 }
 0x36f   :  { %v225_v2 = vpop.permute.xlu1 %224  ;;  %v249_v3 = vpop.permute.xlu0 %248 }
 0x370   :  { %v266_v4 = vsel %vm258_vm1, %v225_v2, %v249_v3 }
 0x371   :  { %v282_v6 = vmul.f32 %v266_v4, %v209_v1 }
 0x373   :  { %v391_v8 = vpop.f32.mrf.mxu3  ;;  %v290_v10 = vadd.f32 %v282_v6, %v274_v5 }
 0x374   :  { %v392_v11 = vadd.f32 %v391_v8, %v331_v7 }
 0x375   :  { %759 = vmatmul.msk.f32.gmra.mxu3 %vm345_vm2, %v290_v10 }
 0x376   :  { %v415_v12 = vsel %vm345_vm2, %v392_v11, -inf }
 0x377   :  { %416 = vmax.xlane.f32.xlu2 %v415_v12  ;;  %v790_v13 = vpop.permute.xlu0 %789 }
 0x378   :  { %v791_v15 = vunpack.i.l.bf16 %v790_v13  ;;  %v792_v17 = vunpack.i.h.bf16 %v790_v13 }
 0x37a   :  { %531 = vmatpush.msrb.mxu0 %v791_v15  ;;  %772 = vmatpush.msrb.mxu2 %v791_v15 }
 0x37b   :  { %v394_v18 = vpop.f32.mrf.mxu3 }
 0x37c   :  { %v395_v19 = vadd.f32 %v394_v18, %v332_v16  ;;  %532 = vmatpush.msrb.mxu0 %v792_v17  ;;  %773 = vmatpush.msrb.mxu2 %v792_v17 }
 0x37e   :  { %v418_v20 = vsel %vm345_vm2, %v395_v19, -inf }
 0x37f   :  { %419 = vmax.xlane.f32.xlu1 %v418_v20 }
 0x383   :  { %v397_v22 = vpop.f32.mrf.mxu3 }
 0x384   :  { %v398_v23 = vadd.f32 %v397_v22, %v333_v21 }
 0x386   :  { %v421_v24 = vsel %vm345_vm2, %v398_v23, -inf }
 0x387   :  { %422 = vmax.xlane.f32.xlu0 %v421_v24 }
 0x38b   :  { %v400_v26 = vpop.f32.mrf.mxu3 }
 0x38c   :  { %v401_v27 = vadd.f32 %v400_v26, %v334_v25 }
 0x38e   :  { %v424_v28 = vsel %vm345_vm2, %v401_v27, -inf }
 0x38f   :  { %425 = vmax.xlane.f32.xlu1 %v424_v28 }
 0x393   :  { %v403_v30 = vpop.f32.mrf.mxu3 }
 0x394   :  { %v404_v31 = vadd.f32 %v403_v30, %v335_v29 }
 0x396   :  { %v427_v32 = vsel %vm345_vm2, %v404_v31, -inf }
 0x397   :  { %428 = vmax.xlane.f32.xlu1 %v427_v32 }
 0x3b8   :  { %v406_v34 = vpop.f32.mrf.mxu3 }
 0x3b9   :  { %v407_v35 = vadd.f32 %v406_v34, %v336_v33 }
 0x3bb   :  { %v430_v36 = vsel %vm345_vm2, %v407_v35, -inf }
 0x3bc   :  { %431 = vmax.xlane.f32.xlu2 %v430_v36 }
 0x3ea   :  { %v417_v37 = vpop.xlane.xlu2 %416 }
 0x3eb   :  { %v439_v38 = vsub.f32 %v392_v11, %v417_v37 }
 0x3ed   :  { %v447_v39 = vmul.f32 1.442695, %v439_v38 }
 0x3ef   :  { %807 = vpow2.f32 %v447_v39 }
 0x3f0   :  { %v409_v41 = vpop.f32.mrf.mxu3 }
 0x3f1   :  { %v410_v42 = vadd.f32 %v409_v41, %v337_v40 }
 0x3f2   :  { %v420_v43 = vpop.xlane.xlu1 %419 }
 0x3f3   :  { %v440_v44 = vsub.f32 %v395_v19, %v420_v43  ;;  %v433_v45 = vsel %vm345_vm2, %v410_v42, -inf }
 0x3f4   :  { %434 = vmax.xlane.f32.xlu2 %v433_v45 }
 0x3f5   :  { %v808_v46 = vpop.eup %807  ;;  %v449_v9 = vmul.f32 1.442695, %v440_v44 }
 0x3f6   :  { %760 = vmatmul.msk.f32.vlgmr.msrb.gmra.mxu0 %vm345_vm2, %v808_v46  ;;  %v463_v3 = vsel %vm345_vm2, %v808_v46, 0.0 }
 0x3f7   :  { %809 = vpow2.f32 %v449_v9  ;;  %v612_v9 = vld [vmem:[%s1265_s7 + $0x38] sm:$0xff] }
 0x3f8   :  { %v412_v47 = vpop.f32.mrf.mxu3  ;;  %709 = vmatpush.msra.mxu2 %v612_v9 }
 0x3f9   :  { %v413_v48 = vadd.f32 %v412_v47, %v338_v14  ;;  %v611_v14 = vld [vmem:[%s1265_s7 + $0x30] sm:$0xff]  ;;  %v610_v47 = vld [vmem:[%s1265_s7 + $0x28] sm:$0xff] }
 0x3fa   :  { %v423_v49 = vpop.xlane.xlu0 %422  ;;  %710 = vmatpush.msra.mxu2 %v611_v14 }
 0x3fb   :  { %v441_v50 = vsub.f32 %v398_v23, %v423_v49  ;;  %v436_v51 = vsel %vm345_vm2, %v413_v48, -inf }
 0x3fc   :  { %437 = vmax.xlane.f32.xlu0 %v436_v51  ;;  %v609_v51 = vld [vmem:[%s1265_s7 + $0x20] sm:$0xff]  ;;  %711 = vmatpush.msra.mxu2 %v610_v47 }
 0x3fd   :  { %v810_v52 = vpop.eup %809  ;;  %v451_v53 = vmul.f32 1.442695, %v441_v50 }
 0x3fe   :  { %761 = vmatmul.msk.f32.gmra.mxu0 %vm345_vm2, %v810_v52  ;;  %v466_v54 = vsel %vm345_vm2, %v810_v52, 0.0  ;;  %v608_v52 = vld [vmem:[%s1265_s7 + $0x18] sm:$0xff]  ;;  %712 = vmatpush.msra.mxu2 %v609_v51 }
 0x3ff   :  { %811 = vpow2.f32 %v451_v53  ;;  %467 = vadd.xlane.f32.xlu1 %v466_v54  ;;  %v607_v53 = vld [vmem:[%s1265_s7 + $0x10] sm:$0xff]  ;;  %v606_v54 = vld [vmem:[%s1265_s7 + $0x8] sm:$0xff] }
 0x400   :  { %713 = vmatpush.msra.mxu2 %v608_v52 }
 0x402   :  { %v426_v55 = vpop.xlane.xlu1 %425  ;;  %714 = vmatpush.msra.mxu2 %v607_v53 }
 0x403   :  { %v442_v56 = vsub.f32 %v401_v27, %v426_v55  ;;  %v605_v55 = vld [vmem:[%s1265_s7] sm:$0xff]  ;;  %s877_s7 = smov [#allocation2]  }
 0x404   :  { %715 = vmatpush.msra.mxu2 %v606_v54 }
 0x405   :  { %v812_v57 = vpop.eup %811  ;;  %v453_v58 = vmul.f32 1.442695, %v442_v56 }
 0x406   :  { %762 = vmatmul.msk.f32.gmra.mxu0 %vm345_vm2, %v812_v57  ;;  %v469_v59 = vsel %vm345_vm2, %v812_v57, 0.0  ;;  %716 = vmatpush.msra.mxu2 %v605_v55 }
 0x407   :  { %813 = vpow2.f32 %v453_v58  ;;  %470 = vadd.xlane.f32.xlu2 %v469_v59 }
 0x40a   :  { %v429_v60 = vpop.xlane.xlu1 %428 }
 0x40b   :  { %v443_v61 = vsub.f32 %v404_v31, %v429_v60 }
 0x40d   :  { %v814_v62 = vpop.eup %813  ;;  %v455_v63 = vmul.f32 1.442695, %v443_v61 }
 0x40e   :  { %763 = vmatmul.msk.f32.gmra.mxu0 %vm345_vm2, %v814_v62  ;;  %v472_v0 = vsel %vm345_vm2, %v814_v62, 0.0 }
 0x40f   :  { %815 = vpow2.f32 %v455_v63  ;;  %473 = vadd.xlane.f32.xlu2 %v472_v0 }
 0x415   :  { %v816_v1 = vpop.eup %815 }
 0x416   :  { %764 = vmatmul.msk.f32.gmra.mxu0 %vm345_vm2, %v816_v1  ;;  %v475_v2 = vsel %vm345_vm2, %v816_v1, 0.0 }
 0x417   :  { %476 = vadd.xlane.f32.xlu1 %v475_v2  ;;  %464 = vadd.xlane.f32.xlu2 %v463_v3 }
 0x42f   :  { %v432_v4 = vpop.xlane.xlu2 %431 }
 0x430   :  { %v444_v5 = vsub.f32 %v407_v35, %v432_v4 }
 0x432   :  { %v457_v6 = vmul.f32 1.442695, %v444_v5 }
 0x434   :  { %817 = vpow2.f32 %v457_v6 }
 0x43a   :  { %v818_v7 = vpop.eup %817 }
 0x43b   :  { %765 = vmatmul.msk.f32.vlgmr.msrb.gmra.mxu2 %vm345_vm2, %v818_v7  ;;  %v478_v8 = vsel %vm345_vm2, %v818_v7, 0.0  ;;  %v688_v7 = vpop.f32.mrf.mxu1 }
 0x43c   :  { %479 = vadd.xlane.f32.xlu1 %v478_v8 }
 0x467   :  { %v435_v10 = vpop.xlane.xlu2 %434 }
 0x468   :  { %v445_v11 = vsub.f32 %v410_v42, %v435_v10 }
 0x46a   :  { %v459_v12 = vmul.f32 1.442695, %v445_v11  ;;  %v691_v11 = vpop.f32.mrf.mxu1 }
 0x46c   :  { %819 = vpow2.f32 %v459_v12 }
 0x46f   :  { %v438_v13 = vpop.xlane.xlu0 %437 }
 0x470   :  { %v446_v15 = vsub.f32 %v413_v48, %v438_v13 }
 0x472   :  { %v820_v16 = vpop.eup %819  ;;  %v461_v17 = vmul.f32 1.442695, %v446_v15  ;;  %v468_v18 = vpop.xlane.xlu1 %467 }
 0x473   :  { %v1212_v19 = vpop.f32.mrf.mxu0  ;;  %766 = vmatmul.msk.f32.gmra.mxu2 %vm345_vm2, %v820_v16  ;;  %v481_v20 = vsel %vm345_vm2, %v820_v16, 0.0 }
 0x474   :  { %821 = vpow2.f32 %v461_v17  ;;  %482 = vadd.xlane.f32.xlu0 %v481_v20 }
 0x475   :  { %823 = vrcp.f32 %v468_v18 }
 0x47a   :  { %v822_v21 = vpop.eup %821  ;;  %v471_v26 = vpop.xlane.xlu2 %470 }
 0x47b   :  { %v824_v22 = vpop.eup %823  ;;  %v537_v23 = vpop.f32.mrf.mxu0  ;;  %767 = vmatmul.msk.f32.gmra.mxu2 %vm345_vm2, %v822_v21  ;;  %v484_v24 = vsel %vm345_vm2, %v822_v21, 0.0  ;;  %825 = vrcp.f32 %v471_v26 }
 0x47c   :  { %v1218_v25 = vmul.f32 %v824_v22, %v537_v23  ;;  %485 = vadd.xlane.f32.xlu0 %v484_v24 }
 0x481   :  { %v826_v31 = vpop.eup %825 }
 0x482   :  { %v474_v30 = vpop.xlane.xlu2 %473 }
 0x483   :  { %v540_v27 = vpop.f32.mrf.mxu0 }
 0x484   :  { %v568_v32 = vmul.f32 %v826_v31, %v540_v27 }
 0x48a   :  { %v477_v28 = vpop.xlane.xlu1 %476  ;;  %v465_v56 = vpop.xlane.xlu2 %464 }
 0x48b   :  { %v543_v29 = vpop.f32.mrf.mxu0  ;;  %827 = vrcp.f32 %v477_v28 }
 0x48c   :  { %829 = vrcp.f32 %v474_v30 }
 0x490   :  { %576 = vrot.lane.b32.xlu0 %v568_v32, %s875_s6 }
 0x491   :  { %v828_v33 = vpop.eup %827 }
 0x492   :  { %v830_v36 = vpop.eup %829 }
 0x493   :  { %v546_v34 = vpop.f32.mrf.mxu0  ;;  %v569_v37 = vmul.f32 %v830_v36, %v543_v29 }
 0x494   :  { %v570_v35 = vmul.f32 %v828_v33, %v546_v34 }
 0x496   :  { %584 = vrot.lane.b32.xlu2 %v570_v35, %s876_s0 }
 0x498   :  { %578 = vrot.lane.b32.xlu0 %v569_v37, %s875_s6 }
 0x4af   :  { %v480_v38 = vpop.xlane.xlu1 %479 }
 0x4b0   :  { %831 = vrcp.f32 %v480_v38 }
 0x4b6   :  { %v832_v39 = vpop.eup %831 }
 0x4be   :  { %v549_v40 = vpop.f32.mrf.mxu2 }
 0x4bf   :  { %v571_v41 = vmul.f32 %v832_v39, %v549_v40 }
 0x4c1   :  { %586 = vrot.lane.b32.xlu2 %v571_v41, %s876_s0 }
 0x4e7   :  { %v483_v42 = vpop.xlane.xlu0 %482 }
 0x4e8   :  { %833 = vrcp.f32 %v483_v42 }
 0x4ee   :  { %v834_v44 = vpop.eup %833 }
 0x4ef   :  { %v486_v43 = vpop.xlane.xlu0 %485 }
 0x4f0   :  { %835 = vrcp.f32 %v486_v43  ;;  %v585_v60 = vpop.permute.xlu2 %584 }
 0x4f1   :  { %837 = vrcp.f32 %v465_v56 }
 0x4f6   :  { %v552_v45 = vpop.f32.mrf.mxu2  ;;  %v836_v48 = vpop.eup %835 }
 0x4f7   :  { %v572_v46 = vmul.f32 %v834_v44, %v552_v45  ;;  %v838_v58 = vpop.eup %837 }
 0x4f8   :  { %v566_v59 = vmul.f32 %v838_v58, %v1212_v19 }
 0x4f9   :  { %592 = vrot.lane.b32.xlu1 %v572_v46, %s874_s24 }
 0x4fe   :  { %v555_v49 = vpop.f32.mrf.mxu2 }
 0x4ff   :  { %v573_v50 = vmul.f32 %v836_v48, %v555_v49 }
 0x501   :  { %594 = vrot.lane.b32.xlu0 %v573_v50, %s874_s24  ;;  %s730_s24 = sshll.u32 %s877_s7, 4  ;;  %s731_s24 = int_to_ptr.vmem [resolvable:$true] %s730_s24 }
 0x502   :  { %v577_v57 = vpop.permute.xlu0 %576 }
 0x503   :  { %v598_v61 = vsel %vm345_vm2, %v566_v59, %v577_v57 }
 0x504   :  { %v600_v0 = vsel %vm35_vm0, %v598_v61, %v585_v60 }
 0x50a   :  { %v579_v62 = vpop.permute.xlu0 %578 }
 0x50b   :  { %v599_v3 = vsel %vm345_vm2, %v1218_v25, %v579_v62 }
 0x51b   :  { %v587_v2 = vpop.permute.xlu2 %586 }
 0x51c   :  { %v601_v4 = vsel %vm35_vm0, %v599_v3, %v587_v2 }
 0x56b   :  { %v593_v63 = vpop.permute.xlu1 %592 }
 0x56c   :  { %v603_v1 = vsel %vm602_vm3, %v600_v0, %v593_v63 }
 0x56d   :  { %770 = vmatmul.msk.f32.vlgmr.msra.gmra.mxu2 %vm694_vm4, %v603_v1 }
 0x573   :  { %v595_v5 = vpop.permute.xlu0 %594 }
 0x574   :  { %v604_v6 = vsel %vm602_vm3, %v601_v4, %v595_v5 }
 0x575   :  { %771 = vmatmul.msk.f32.gmra.mxu2 %vm694_vm4, %v604_v6 }
 0x5f0   :  { %v718_v8 = vpop.f32.mrf.mxu2 }
 0x5f1   :  { %v719_v10 = vadd.f32 %v718_v8, %v688_v7 }
 0x5f3   :  { %724 = vst.msk [vmem:[#allocation2] sm:$0xff] %vm35_vm0, %v719_v10 }
 0x5f8   :  { %v721_v12 = vpop.f32.mrf.mxu2 }
 0x5f9   :  { %v722_v13 = vadd.f32 %v721_v12, %v691_v11 }
 0x5fb   :  { %725 = vst.msk [vmem:[#allocation2 + $0x8] sm:$0xff] %vm35_vm0, %v722_v13 }
 0x5fc   :  { %738 = dma.vmem_to_hbm [thread:$0]  %s731_s24, 256, %s733_s27, [#allocation3], %s878_s28, %s878_s28, %s872_s13  }
 0x5fd   :  { %863 = dma.done.wait [#allocation3], 256  }
 0x5fe   :  { %864 = vsyncadd [#allocation3], 4294967040 }
 0x5ff   :  { %743 = vsyncpa [#allocation3], 1 }

</bundles_post_ra>
